<compile_context>
chip_gen: v7x
topology: tpu7x:2x2x1
jax: 0.10.0
libtpu: 0.0.40
codegen_flags: <defaults>
</compile_context>

<pallas_src>
import functools

import jax
import jax.numpy as jnp
from jax.experimental import pallas as pl
from jax.experimental.pallas import tpu as pltpu

WINDOW = 3          # self.win
FEATURES = 2        # self.feat
FEAT_PAD = 8        # conv out-channels zero-padded 2 -> 8 (free, keeps lanes tidy)
EMB = 300           # hard-coded conv kernel width in nn.Conv2d(1, feat, (win, 300))
NUM_CLASSES = 4     # fc1 output dim
CHUNK_T = 512       # time steps handled per inner-loop chunk (multiple of 8)


def _round_up(x, m):
    return (x + m - 1) // m * m


def _vmem_limit_bytes():
    """Per-generation scoped-VMEM budget (v7x: 64 MiB phys, v5e/v6e: 128 MiB)."""
    phys = 64 << 20                              # conservative default = v7x per-core VMEM
    try:
        cap = getattr(pltpu.get_tpu_info(), "vmem_capacity_bytes", None)
        if cap:
            phys = int(cap)
    except Exception:
        pass
    return min(phys - (16 << 20), 100 << 20)     # leave headroom for compiler scratch


def convnet_kernel(x_ref, wconv_ref, bconv_ref, wfc_ref, bfc_ref, o_ref,
                   *, t_out, ts, n_chunks, overlap):
    # x_ref:     (TB, SEQ_PAD, EMB)              VMEM, bf16 (streamed batch tile)
    # wconv_ref: (EMB, WINDOW*FEAT_PAD)          VMEM, bf16 (fused conv taps, resident)
    # bconv_ref: (1, FEAT_PAD)                   VMEM, f32  (zero-padded)
    # wfc_ref:   (FEAT_PAD, NUM_CLASSES)         VMEM, f32  (padded rows are zero)
    # bfc_ref:   (1, NUM_CLASSES)                VMEM, f32
    # o_ref:     (TB, NUM_CLASSES)               VMEM, f32
    tb = x_ref.shape[0]
    emb = x_ref.shape[2]
    rows = ts + overlap                          # chunk + window overlap, multiple of 8
    n = tb * rows

    w_fused = wconv_ref[...]                     # read once, reused by every chunk

    def chunk(c, pooled):
        start = c * ts
        xc = x_ref[:, pl.ds(pl.multiple_of(start, 8), rows), :]     # (tb, rows, emb)
        # One fused bf16 matmul for all WINDOW taps (f32 accumulation on the MXU).
        y = jnp.dot(xc.reshape(n, emb), w_fused,
                    preferred_element_type=jnp.float32)              # (n, WINDOW*8)
        # Re-align taps in time: contribution of tap w at output time t is
        # y[t + w, 8w:8w+8]; roll by (n - w) == roll by -w (XLU sublane rotate).
        acc = y[:, 0:FEAT_PAD]
        for w in range(1, WINDOW):
            tap = y[:, w * FEAT_PAD:(w + 1) * FEAT_PAD]               # (n, 8) lane slice
            acc = acc + pltpu.roll(tap, n - w, axis=0)                # row r <- row r+w
        acc = acc.reshape(tb, rows, FEAT_PAD)
        # Valid output times: local t < ts AND global t < t_out.  Everything else
        # (chunk tail, zero-padded rows, roll wrap-around) is masked to -inf.
        t_idx = jax.lax.broadcasted_iota(jnp.int32, (tb, rows, FEAT_PAD), 1)
        limit = jnp.minimum(ts, t_out - start)
        acc = jnp.where(t_idx < limit, acc, -jnp.inf)
        return jnp.maximum(pooled, jnp.max(acc, axis=1))              # running pool

    pooled = jax.lax.fori_loop(
        0, n_chunks, chunk,
        jnp.full((tb, FEAT_PAD), -jnp.inf, dtype=jnp.float32))

    # Conv bias + ReLU moved after the full-extent max-pool (exact: monotone).
    pooled = jnp.maximum(pooled + bconv_ref[...], 0.0)                # (tb, 8)
    # fc1: padded rows of wfc are zero -> padding channels contribute nothing.
    logits = jnp.dot(pooled, wfc_ref[...],
                     preferred_element_type=jnp.float32) + bfc_ref[...]
    # dropout1: identity at inference; last_layer=True -> log_softmax over dim=1.
    m = jnp.max(logits, axis=-1, keepdims=True)
    z = logits - m
    o_ref[...] = z - jnp.log(jnp.sum(jnp.exp(z), axis=-1, keepdims=True))


def convnet_forward(x_nchw, wconv_torch, bconv, wfc_torch, bfc, *, chunk_t=CHUNK_T):
    """x_nchw: (B, 1, SEQ, EMB) like the PyTorch module (eval mode, last_layer=True)."""
    B, C, SEQ, E = x_nchw.shape
    assert C == 1 and E == EMB and SEQ >= WINDOW
    t_out = SEQ - WINDOW + 1

    # In-kernel time chunking: bounds the lane-sparse f32 matmul intermediate.
    ts = min(_round_up(chunk_t, 8), _round_up(t_out, 8))
    n_chunks = -(-t_out // ts)
    overlap = _round_up(WINDOW - 1, 8)
    rows = ts + overlap
    seq_pad = n_chunks * ts + overlap            # multiple of 8, >= SEQ

    # bf16 activations; zero-pad batch + time on the host (pads are masked / sliced).
    x = x_nchw[:, 0, :, :].astype(jnp.bfloat16)                       # (B, SEQ, EMB)

    # Fused conv weight: (EMB, WINDOW*FEAT_PAD); tap w occupies lanes [8w, 8w+8).
    w = jnp.transpose(wconv_torch[:, 0, :, :], (2, 1, 0))             # (EMB, WIN, FEAT)
    w = jnp.pad(w, ((0, 0), (0, 0), (0, FEAT_PAD - FEATURES)))
    w_fused = w.reshape(EMB, WINDOW * FEAT_PAD).astype(jnp.bfloat16)  # (300, 24)
    bconv2 = jnp.pad(bconv.astype(jnp.float32).reshape(1, FEATURES),
                     ((0, 0), (0, FEAT_PAD - FEATURES)))              # (1, 8)
    wfc = jnp.pad(wfc_torch.T.astype(jnp.float32),
                  ((0, FEAT_PAD - FEATURES), (0, 0)))                 # (8, 4)
    bfc2 = bfc.astype(jnp.float32).reshape(1, NUM_CLASSES)            # (1, 4)

    # Batch tile: largest multiple of 8 whose double-buffered x block plus the
    # per-chunk f32 intermediates fit the per-generation VMEM budget, capped so the
    # grid still has several blocks (megacore sharding on v7x).
    vmem_limit = _vmem_limit_bytes()
    lanes_x = _round_up(EMB, 128)                                     # 300 -> 384 lanes
    bytes_x_row = seq_pad * lanes_x * 2                               # bf16, per buffer
    bytes_y_row = rows * 128 * 4 * 3                                  # ~3 live f32 chunk temps
    budget = int(vmem_limit * 0.7)
    tb_vmem = max(8, (budget // (2 * bytes_x_row + bytes_y_row)) // 8 * 8)
    tb_split = max(8, _round_up(-(-B // 4), 8))                       # aim for >=4 blocks
    tb = min(tb_vmem, tb_split)
    b_pad = _round_up(B, tb)

    x = jnp.pad(x, ((0, b_pad - B), (0, seq_pad - SEQ), (0, 0)))      # zeros

    kernel = functools.partial(convnet_kernel, t_out=t_out, ts=ts,
                               n_chunks=n_chunks, overlap=overlap)
    out = pl.pallas_call(
        kernel,
        out_shape=jax.ShapeDtypeStruct((b_pad, NUM_CLASSES), jnp.float32),
        grid=(b_pad // tb,),
        in_specs=[
            pl.BlockSpec((tb, seq_pad, EMB), lambda i: (i, 0, 0)),           # x: streamed
            pl.BlockSpec((EMB, WINDOW * FEAT_PAD), lambda i: (0, 0)),        # resident
            pl.BlockSpec((1, FEAT_PAD), lambda i: (0, 0)),
            pl.BlockSpec((FEAT_PAD, NUM_CLASSES), lambda i: (0, 0)),
            pl.BlockSpec((1, NUM_CLASSES), lambda i: (0, 0)),
        ],
        out_specs=pl.BlockSpec((tb, NUM_CLASSES), lambda i: (i, 0)),
        compiler_params=pltpu.CompilerParams(
            dimension_semantics=("parallel",),                                # megacore
            vmem_limit_bytes=vmem_limit),
    )(x, w_fused, bconv2, wfc, bfc2)
    return out[:B]


def reference_forward(x_nchw, wconv_torch, bconv, wfc_torch, bfc):
    """Pure-JAX reference matching PyTorch semantics (eval mode, last_layer=True),
    with x / conv weight rounded to bf16 exactly like the kernel path."""
    _, _, SEQ, _ = x_nchw.shape
    hi = jax.lax.Precision.HIGHEST
    x = x_nchw[:, 0, :, :].astype(jnp.bfloat16).astype(jnp.float32)
    w = wconv_torch[:, 0, :, :].astype(jnp.bfloat16).astype(jnp.float32)  # (F, W, E)
    t_out = SEQ - WINDOW + 1
    patches = jnp.stack([x[:, i:i + t_out, :] for i in range(WINDOW)], axis=2)
    conv = jnp.einsum('btwe,fwe->btf', patches, w, precision=hi) + bconv
    conv = jnp.maximum(conv, 0.0)
    pooled = jnp.max(conv, axis=1)                                        # (B, FEAT)
    logits = jnp.dot(pooled, wfc_torch.T, precision=hi) + bfc             # (B, 4)
    return jax.nn.log_softmax(logits, axis=-1)


if __name__ == "__main__":
    key = jax.random.PRNGKey(0)
    kx, kw1, kb1, kw2, kb2, kx2 = jax.random.split(key, 6)

    # deterministic synthetic parameters (shapes from __init__)
    wconv = jax.random.normal(kw1, (FEATURES, 1, WINDOW, EMB), dtype=jnp.float32) * 0.05
    bconv = jax.random.normal(kb1, (FEATURES,), dtype=jnp.float32) * 0.05
    wfc = jax.random.normal(kw2, (NUM_CLASSES, FEATURES), dtype=jnp.float32) * 0.5
    bfc = jax.random.normal(kb2, (NUM_CLASSES,), dtype=jnp.float32) * 0.5

    # Small shape straight from the module's forward: (B=2, 1, SEQ=8, 300).
    x = jax.random.normal(kx, (2, 1, 8, EMB), dtype=jnp.float32)
    out = jax.block_until_ready(convnet_forward(x, wconv, bconv, wfc, bfc))
    ref = reference_forward(x, wconv, bconv, wfc, bfc)
    assert out.shape == (2, NUM_CLASSES)
    assert jnp.allclose(out, ref, atol=2e-3, rtol=2e-3), (out, ref)

    # Second check: exercises the multi-chunk time loop, roll wrap masking and
    # ragged-batch zero padding (B=5, SEQ=24, 3 chunks of 8 output steps).
    x2 = jax.random.normal(kx2, (5, 1, 24, EMB), dtype=jnp.float32)
    out2 = jax.block_until_ready(convnet_forward(x2, wconv, bconv, wfc, bfc, chunk_t=8))
    ref2 = reference_forward(x2, wconv, bconv, wfc, bfc)
    assert out2.shape == (5, NUM_CLASSES)
    assert jnp.allclose(out2, ref2, atol=2e-3, rtol=2e-3), (out2, ref2)

    print("KERNEL_OK")
</pallas_src>

<mosaic_0001>
module attributes {stable_mosaic.version = 11 : i64} {
  func.func @convnet_kernel(%arg0: i32, %arg1: memref<8x16x300xbf16, #tpu.memory_space<vmem>>, %arg2: memref<300x24xbf16, #tpu.memory_space<vmem>>, %arg3: memref<1x8xf32, #tpu.memory_space<vmem>>, %arg4: memref<8x4xf32, #tpu.memory_space<vmem>>, %arg5: memref<1x4xf32, #tpu.memory_space<vmem>>, %arg6: memref<8x4xf32, #tpu.memory_space<vmem>>) attributes {dimension_semantics = [#tpu.dimension_semantics<parallel>], iteration_bounds = array<i64: 1>, scalar_prefetch = 0 : i64, scratch_operands = 0 : i64, tpu.core_type = #tpu.core_type<tc>, window_params = [{transform_indices = @transform_0, window_bounds = array<i64: 8, 16, 300>}, {pipeline_mode = #tpu.pipeline_mode<synchronous>, transform_indices = @transform_1, window_bounds = array<i64: 300, 24>}, {pipeline_mode = #tpu.pipeline_mode<synchronous>, transform_indices = @transform_2, window_bounds = array<i64: 1, 8>}, {pipeline_mode = #tpu.pipeline_mode<synchronous>, transform_indices = @transform_3, window_bounds = array<i64: 8, 4>}, {pipeline_mode = #tpu.pipeline_mode<synchronous>, transform_indices = @transform_4, window_bounds = array<i64: 1, 4>}, {transform_indices = @transform_5, window_bounds = array<i64: 8, 4>}]} {
    %c0 = arith.constant 0 : index
    %c0_0 = arith.constant 0 : index
    %0 = vector.load %arg2[%c0, %c0_0] : memref<300x24xbf16, #tpu.memory_space<vmem>>, vector<300x24xbf16>
    %cst = arith.constant 0xFF800000 : f32
    %1 = vector.broadcast %cst : f32 to vector<8x8xf32>
    %c0_i32 = arith.constant 0 : i32
    %c8_i32 = arith.constant 8 : i32
    %2 = arith.muli %c0_i32, %c8_i32 : i32
    %3 = tpu.assume_multiple %2, 8 : i32
    %c0_1 = arith.constant 0 : index
    %4 = arith.index_cast %3 : i32 to index
    %c0_2 = arith.constant 0 : index
    %5 = vector.load %arg1[%c0_1, %4, %c0_2] : memref<8x16x300xbf16, #tpu.memory_space<vmem>>, vector<8x16x300xbf16>
    %6 = vector.shape_cast %5 : vector<8x16x300xbf16> to vector<128x300xbf16>
    %cst_3 = arith.constant dense<0.000000e+00> : vector<128x24xf32>
    %7 = tpu.matmul %6, %0, %cst_3 {dimension_numbers = #tpu.dot_dimension_numbers<[1], [0], [0], [1], [0, 0, 1, 1], [], []>} : vector<128x300xbf16>, vector<300x24xbf16>, vector<128x24xf32> -> vector<128x24xf32>
    %8 = vector.extract_strided_slice %7 {offsets = [0, 0], sizes = [128, 8], strides = [1, 1]} : vector<128x24xf32> to vector<128x8xf32>
    %9 = vector.extract_strided_slice %7 {offsets = [0, 8], sizes = [128, 8], strides = [1, 1]} : vector<128x24xf32> to vector<128x8xf32>
    %c127_i32 = arith.constant 127 : i32
    %10 = tpu.dynamic_rotate %9 by %c127_i32 dim 0 : vector<128x8xf32>, i32 -> vector<128x8xf32>
    %11 = arith.addf %8, %10 : vector<128x8xf32>
    %12 = vector.extract_strided_slice %7 {offsets = [0, 16], sizes = [128, 8], strides = [1, 1]} : vector<128x24xf32> to vector<128x8xf32>
    %c126_i32 = arith.constant 126 : i32
    %13 = tpu.dynamic_rotate %12 by %c126_i32 dim 0 : vector<128x8xf32>, i32 -> vector<128x8xf32>
    %14 = arith.addf %11, %13 : vector<128x8xf32>
    %15 = vector.shape_cast %14 : vector<128x8xf32> to vector<8x16x8xf32>
    %16 = tpu.iota {dimensions = array<i32: 1>} : vector<8x16x8xi32>
    %c6_i32 = arith.constant 6 : i32
    %17 = arith.subi %c6_i32, %2 : i32
    %c8_i32_4 = arith.constant 8 : i32
    %18 = arith.minsi %c8_i32_4, %17 : i32
    %19 = vector.broadcast %18 : i32 to vector<8x16x8xi32>
    %20 = arith.cmpi slt, %16, %19 : vector<8x16x8xi32>
    %cst_5 = arith.constant 0xFF800000 : f32
    %21 = vector.broadcast %cst_5 : f32 to vector<8x16x8xf32>
    %22 = arith.select %20, %15, %21 : vector<8x16x8xi1>, vector<8x16x8xf32>
    %cst_6 = arith.constant dense<0xFF800000> : vector<8x8xf32>
    %23 = vector.multi_reduction <maximumf>, %22, %cst_6 [1] : vector<8x16x8xf32> to vector<8x8xf32>
    %24 = arith.maximumf %1, %23 : vector<8x8xf32>
    %c1_i32 = arith.constant 1 : i32
    %c0_7 = arith.constant 0 : index
    %c0_8 = arith.constant 0 : index
    %25 = vector.load %arg3[%c0_7, %c0_8] : memref<1x8xf32, #tpu.memory_space<vmem>>, vector<1x8xf32>
    %26 = vector.broadcast %25 : vector<1x8xf32> to vector<8x8xf32>
    %27 = arith.addf %24, %26 : vector<8x8xf32>
    %cst_9 = arith.constant 0.000000e+00 : f32
    %28 = vector.broadcast %cst_9 : f32 to vector<8x8xf32>
    %29 = arith.maximumf %27, %28 : vector<8x8xf32>
    %c0_10 = arith.constant 0 : index
    %c0_11 = arith.constant 0 : index
    %30 = vector.load %arg4[%c0_10, %c0_11] : memref<8x4xf32, #tpu.memory_space<vmem>>, vector<8x4xf32>
    %cst_12 = arith.constant dense<0.000000e+00> : vector<8x4xf32>
    %31 = tpu.matmul %29, %30, %cst_12 {dimension_numbers = #tpu.dot_dimension_numbers<[1], [0], [0], [1], [0, 0, 1, 1], [], []>} : vector<8x8xf32>, vector<8x4xf32>, vector<8x4xf32> -> vector<8x4xf32>
    %c0_13 = arith.constant 0 : index
    %c0_14 = arith.constant 0 : index
    %32 = vector.load %arg5[%c0_13, %c0_14] : memref<1x4xf32, #tpu.memory_space<vmem>>, vector<1x4xf32>
    %33 = vector.broadcast %32 : vector<1x4xf32> to vector<8x4xf32>
    %34 = arith.addf %31, %33 : vector<8x4xf32>
    %cst_15 = arith.constant dense<0xFF800000> : vector<8xf32>
    %35 = vector.multi_reduction <maximumf>, %34, %cst_15 [1] : vector<8x4xf32> to vector<8xf32>
    %36 = vector.shape_cast %35 : vector<8xf32> to vector<8x1xf32>
    %37 = vector.broadcast %36 : vector<8x1xf32> to vector<8x4xf32>
    %38 = arith.subf %34, %37 : vector<8x4xf32>
    %39 = math.exp %38 : vector<8x4xf32>
    %cst_16 = arith.constant dense<0.000000e+00> : vector<8xf32>
    %40 = vector.multi_reduction <add>, %39, %cst_16 [1] : vector<8x4xf32> to vector<8xf32>
    %41 = vector.shape_cast %40 : vector<8xf32> to vector<8x1xf32>
    %42 = math.log %41 : vector<8x1xf32>
    %43 = vector.broadcast %42 : vector<8x1xf32> to vector<8x4xf32>
    %44 = arith.subf %38, %43 : vector<8x4xf32>
    %c0_17 = arith.constant 0 : index
    %c0_18 = arith.constant 0 : index
    %45 = vector.load %arg6[%c0_17, %c0_18] : memref<8x4xf32, #tpu.memory_space<vmem>>, vector<8x4xf32>
    tpu.vector_store %arg6[%c0_17, %c0_18], %44 {strides = array<i32>} : memref<8x4xf32, #tpu.memory_space<vmem>>, vector<8x4xf32>,
    return
  }
  func.func @transform_0(%arg0: i32) -> (i32, i32, i32) {
    %c0_i32 = arith.constant 0 : i32
    %c0_i32_0 = arith.constant 0 : i32
    %c0_i32_1 = arith.constant 0 : i32
    return %arg0, %c0_i32, %c0_i32_0 : i32, i32, i32
  }
  func.func @transform_1(%arg0: i32) -> (i32, i32) {
    %c0_i32 = arith.constant 0 : i32
    %c0_i32_0 = arith.constant 0 : i32
    %c0_i32_1 = arith.constant 0 : i32
    return %c0_i32, %c0_i32_0 : i32, i32
  }
  func.func @transform_2(%arg0: i32) -> (i32, i32) {
    %c0_i32 = arith.constant 0 : i32
    %c0_i32_0 = arith.constant 0 : i32
    %c0_i32_1 = arith.constant 0 : i32
    return %c0_i32, %c0_i32_0 : i32, i32
  }
  func.func @transform_3(%arg0: i32) -> (i32, i32) {
    %c0_i32 = arith.constant 0 : i32
    %c0_i32_0 = arith.constant 0 : i32
    %c0_i32_1 = arith.constant 0 : i32
    return %c0_i32, %c0_i32_0 : i32, i32
  }
  func.func @transform_4(%arg0: i32) -> (i32, i32) {
    %c0_i32 = arith.constant 0 : i32
    %c0_i32_0 = arith.constant 0 : i32
    %c0_i32_1 = arith.constant 0 : i32
    return %c0_i32, %c0_i32_0 : i32, i32
  }
  func.func @transform_5(%arg0: i32) -> (i32, i32) {
    %c0_i32 = arith.constant 0 : i32
    %c0_i32_0 = arith.constant 0 : i32
    return %arg0, %c0_i32 : i32, i32
  }
}

</mosaic_0001>

<bundles_post_ra>
// kernel: tpu_custom_call.1
= control target key start
LH: loop header
LB: loop body
LE: loop exit
PB: predicated region body
PF: predicated region fallthrough
CT: control target
= control target key end

     0   :  { %vm327_vm0 = vcmask 359424   ;;  %vm352_vm1 = vcmask 1045504   ;;  %s1238_s27 = smov 112   ;;  %vm1240_vm2 = vmmov 0   ;;  %vm780_vm5 = vcmask 64512   ;;  %s1565_s1 = inlined_call_operand.vmem [shape: bf16[300,24], index: 1, kind: input, shape index: {}]   ;;  %s1566_s0 = inlined_call_operand.vmem [shape: bf16[8,16,300], index: 0, kind: input, shape index: {}]   ;;  %s1567_s3 = inlined_call_operand.vmem [shape: f32[8,4], index: 3, kind: input, shape index: {}]   ;;  %s1568_s2 = inlined_call_operand.vmem [shape: f32[1,8], index: 2, kind: input, shape index: {}]   ;;  %s1569_s4 = inlined_call_operand.vmem [shape: f32[1,4], index: 4, kind: input, shape index: {}]   ;;  %s1570_s5 = inlined_call_operand.vmem [shape: f32[8,4], index: 5, kind: output, shape index: {}]  }
   0x1   :  { %v1182_v0 = vld [vmem:[%s1565_s1 + $0x40] sm:$0xff]   ;;  %v1184_v2 = vld [vmem:[%s1565_s1 + $0x48] sm:$0xff]   ;;  %v1186_v4 = vld [vmem:[%s1565_s1 + $0x50] sm:$0xff]   ;;  %vm893_vm6 = vcmask 1041409   ;;  %vm896_vm7 = vcmask 1042434   ;;  %vm899_vm8 = vcmask 1043459  }
   0x2   :  { %v1183_v1 = vld [vmem:[%s1565_s1] sm:$0xff]   ;;  %1057 = vmatprep.subr.bf16.mxu0 %v1182_v0  ;;  %1161 = vmatprep.subr.bf16.mxu1 %v1182_v0  ;;  %v1185_v3 = vld [vmem:[%s1565_s1 + $0x8] sm:$0xff]   ;;  %v1187_v5 = vld [vmem:[%s1565_s1 + $0x10] sm:$0xff]   ;;  %vm902_vm9 = vcmask 1044484   ;;  %vm905_vm10 = vcmask 1045509   ;;  %vm908_vm11 = vcmask 1046534  }
   0x3   :  { %1058 = vmatpush3.bf16.msra.mxu0 %v1183_v1  ;;  %1169 = vmatpush3.bf16.msra.mxu1 %v1183_v1  ;;  %v1188_v6 = vld [vmem:[%s1565_s1 + $0x58] sm:$0xff]   ;;  %v1190_v8 = vld [vmem:[%s1565_s1 + $0x60] sm:$0xff]   ;;  %v1192_v10 = vld [vmem:[%s1565_s1 + $0x68] sm:$0xff]   ;;  %vm911_vm12 = vcmask 1047559   ;;  %vm985_vm13 = vcmask 31744  }
   0x4   :  { %1059 = vmatprep.subr.bf16.mxu0 %v1184_v2  ;;  %1162 = vmatprep.subr.bf16.mxu1 %v1184_v2  ;;  %v1189_v7 = vld [vmem:[%s1565_s1 + $0x18] sm:$0xff]   ;;  %v1191_v9 = vld [vmem:[%s1565_s1 + $0x20] sm:$0xff]   ;;  %v1193_v13 = vld [vmem:[%s1565_s1 + $0x28] sm:$0xff]  }
   0x5   :  { %v1200_v11 = vld [vmem:[%s1566_s0 + $0x4] ss:$12 sps:$4 sm:$0xff]   ;;  %v1203_v12 = vld [vmem:[%s1566_s0 + $0xac] ss:$12 sps:$4 sm:$0xff]   ;;  %v1201_v20 = vld [vmem:[%s1566_s0 + $0xa8] ss:$12 sps:$4 sm:$0xff]  }
   0x6   :  { %v1194_v14 = vld [vmem:[%s1565_s1 + $0x70] sm:$0xff]   ;;  %388 = vmatprep.mubr.bf16.mxu0 %v1200_v11  ;;  %444 = vmatprep.mubr.bf16.mxu1 %v1203_v12  ;;  %v1196_v16 = vld [vmem:[%s1565_s1 + $0x78] sm:$0xff]   ;;  %v1204_v18 = vld [vmem:[%s1565_s1 + $0x80] sm:$0xff]  }
   0x7   :  { %1060 = vmatpush3.bf16.msra.mxu0 %v1185_v3  ;;  %1170 = vmatpush3.bf16.msra.mxu1 %v1185_v3  ;;  %v1195_v15 = vld [vmem:[%s1565_s1 + $0x30] sm:$0xff]   ;;  %v1197_v17 = vld [vmem:[%s1565_s1 + $0x38] sm:$0xff]   ;;  %v1198_v19 = vld [vmem:[%s1566_s0] ss:$12 sps:$4 sm:$0xff]  }
   0x8   :  { %1061 = vmatprep.subr.bf16.mxu0 %v1186_v4  ;;  %1163 = vmatprep.subr.bf16.mxu1 %v1186_v4  ;;  %v1206_v21 = vld [vmem:[%s1566_s0 + $0x1c] ss:$12 sps:$4 sm:$0xff]   ;;  %v1209_v24 = vld [vmem:[%s1565_s1 + $0x90] sm:$0x3f]   ;;  %v1208_v25 = vld [vmem:[%s1566_s0 + $0x18] ss:$12 sps:$4 sm:$0xff]  }
   0x9   :  { %v1205_v22 = vld [vmem:[%s1565_s1 + $0x88] sm:$0xff]   ;;  %v1212_v26 = vld [vmem:[%s1566_s0 + $0x34] ss:$12 sps:$4 sm:$0xff]   ;;  %v354_v27 = vsel %vm352_vm1, %v1209_v24, 0  ;;  %v1215_v29 = vld [vmem:[%s1566_s0 + $0x38] ss:$12 sps:$4 sm:$0xff]  }
   0xa   :  { %v1210_v23 = vld [vmem:[%s1566_s0 + $0x8] ss:$12 sps:$4 sm:$0xff]   ;;  %v1211_v28 = vld [vmem:[%s1566_s0 + $0x20] ss:$12 sps:$4 sm:$0xff]   ;;  %v1214_v30 = vld [vmem:[%s1566_s0 + $0x30] ss:$12 sps:$4 sm:$0xff]  }
   0xb   :  { %1062 = vmatpush3.bf16.msra.mxu0 %v1187_v5  ;;  %1171 = vmatpush3.bf16.msra.mxu1 %v1187_v5  ;;  %v1217_v31 = vld [vmem:[%s1566_s0 + $0x4c] ss:$12 sps:$4 sm:$0xff]   ;;  %v1216_v32 = vld [vmem:[%s1566_s0 + $0x50] ss:$12 sps:$4 sm:$0xff]   ;;  %v1220_v33 = vld [vmem:[%s1566_s0 + $0x68] ss:$12 sps:$4 sm:$0xff]  }
   0xc   :  { %1063 = vmatprep.subr.bf16.mxu0 %v1188_v6  ;;  %1164 = vmatprep.subr.bf16.mxu1 %v1188_v6  ;;  %v1219_v34 = vld [vmem:[%s1566_s0 + $0x48] ss:$12 sps:$4 sm:$0xff]   ;;  %v1222_v35 = vld [vmem:[%s1566_s0 + $0x64] ss:$12 sps:$4 sm:$0xff]   ;;  %v1221_v36 = vld [vmem:[%s1566_s0 + $0x80] ss:$12 sps:$4 sm:$0xff]  }
   0xd   :  { %v1225_v37 = vld [vmem:[%s1566_s0 + $0x98] ss:$12 sps:$4 sm:$0xff]   ;;  %v1224_v38 = vld [vmem:[%s1566_s0 + $0x60] ss:$12 sps:$4 sm:$0xff]   ;;  %v1227_v39 = vld [vmem:[%s1566_s0 + $0x7c] ss:$12 sps:$4 sm:$0xff]  }
   0xe   :  { %v1226_v40 = vld [vmem:[%s1566_s0 + $0xb0] ss:$12 sps:$4 sm:$0xff]   ;;  %v1229_v41 = vld [vmem:[%s1566_s0 + $0x78] ss:$12 sps:$4 sm:$0xff]   ;;  %v1230_v42 = vld [vmem:[%s1566_s0 + $0x94] ss:$12 sps:$4 sm:$0xff]  }
   0xf   :  { %1064 = vmatpush3.bf16.msra.mxu0 %v1189_v7  ;;  %1172 = vmatpush3.bf16.msra.mxu1 %v1189_v7  ;;  %v1232_v43 = vld [vmem:[%s1566_s0 + $0x90] ss:$12 sps:$4 sm:$0xff]   ;;  %s1237_s0 = smov 120  }
  0x10   :  { %1065 = vmatprep.subr.bf16.mxu0 %v1190_v8  ;;  %1165 = vmatprep.subr.bf16.mxu1 %v1190_v8 }
  0x13   :  { %1066 = vmatpush3.bf16.msra.mxu0 %v1191_v9  ;;  %1173 = vmatpush3.bf16.msra.mxu1 %v1191_v9 }
  0x14   :  { %1067 = vmatprep.subr.bf16.mxu0 %v1192_v10  ;;  %1166 = vmatprep.subr.bf16.mxu1 %v1192_v10 }
  0x17   :  { %1068 = vmatpush3.bf16.msra.mxu0 %v1193_v13  ;;  %1174 = vmatpush3.bf16.msra.mxu1 %v1193_v13 }
  0x18   :  { %1069 = vmatprep.subr.bf16.mxu0 %v1194_v14  ;;  %1167 = vmatprep.subr.bf16.mxu1 %v1194_v14 }
  0x1b   :  { %1070 = vmatpush3.bf16.msra.mxu0 %v1195_v15  ;;  %1175 = vmatpush3.bf16.msra.mxu1 %v1195_v15 }
  0x1c   :  { %1071 = vmatprep.subr.bf16.mxu0 %v1196_v16  ;;  %1168 = vmatprep.subr.bf16.mxu1 %v1196_v16 }
  0x1f   :  { %1072 = vmatpush3.bf16.msra.mxu0 %v1197_v17  ;;  %1176 = vmatpush3.bf16.msra.mxu1 %v1197_v17 }
  0x20   :  { %1134 = vmatprep.subr.bf16.mxu1 %v1204_v18 }
  0x22   :  { %389 = vmatmul.mubr.bf16.vlgmr.msra.gmra.mrb[0].mxu0 %v1198_v19  ;;  %445 = vmatmul.mubr.bf16.vlgmr.msra.gmra.mrb[0].mxu1 %v1201_v20 }
  0x23   :  { %1135 = vmatpush3.bf16.msra.mxu1 %v1204_v18  ;;  %396 = vmatprep.mubr.bf16.mxu0 %v1206_v21 }
  0x24   :  { %1136 = vmatprep.subr.bf16.mxu1 %v1205_v22  ;;  %1140 = vmatprep.mubr.msk.bf16.mxu1 %vm327_vm0, %v1210_v23 }
  0x27   :  { %1137 = vmatpush3.bf16.msra.mxu1 %v1205_v22 }
  0x28   :  { %1177 = vmatprep.subr.msk.bf16.mxu1 %vm352_vm1, %v1209_v24 }
  0x2a   :  { %397 = vmatmul.mubr.bf16.gmra.mrb[4].mxu0 %v1208_v25 }
  0x2b   :  { %1139 = vmatpush3.bf16.msra.mxu1 %v354_v27  ;;  %404 = vmatprep.mubr.bf16.mxu0 %v1212_v26 }
  0x2e   :  { %1141 = vmatmul.mubr.msk.bf16.vlgmr.msra.gmra.mrb[4].mxu1 %vm327_vm0, %v1211_v28 }
  0x2f   :  { %1144 = vmatprep.mubr.msk.bf16.mxu1 %vm327_vm0, %v1215_v29 }
  0x32   :  { %405 = vmatmul.mubr.bf16.gmra.mrb[8].mxu0 %v1214_v30 }
  0x33   :  { %412 = vmatprep.mubr.bf16.mxu0 %v1217_v31 }
  0x36   :  { %1145 = vmatmul.mubr.msk.bf16.gmra.mrb[8].mxu1 %vm327_vm0, %v1216_v32 }
  0x37   :  { %1148 = vmatprep.mubr.msk.bf16.mxu1 %vm327_vm0, %v1220_v33 }
  0x3a   :  { %413 = vmatmul.mubr.bf16.gmra.mrb[12].mxu0 %v1219_v34 }
  0x3b   :  { %420 = vmatprep.mubr.bf16.mxu0 %v1222_v35 }
  0x3e   :  { %1149 = vmatmul.mubr.msk.bf16.gmra.mrb[12].mxu1 %vm327_vm0, %v1221_v36 }
  0x3f   :  { %1152 = vmatprep.mubr.msk.bf16.mxu1 %vm327_vm0, %v1225_v37 }
  0x42   :  { %421 = vmatmul.mubr.bf16.gmra.mrb[16].mxu0 %v1224_v38 }
  0x43   :  { %428 = vmatprep.mubr.bf16.mxu0 %v1227_v39 }
  0x46   :  { %1153 = vmatmul.mubr.msk.bf16.gmra.mrb[16].mxu1 %vm327_vm0, %v1226_v40 }
  0x4a   :  { %429 = vmatmul.mubr.bf16.gmra.mrb[20].mxu0 %v1229_v41 }
  0x4b   :  { %436 = vmatprep.mubr.bf16.mxu0 %v1230_v42 }
  0x52   :  { %437 = vmatmul.mubr.bf16.gmra.mrb[24].mxu0 %v1232_v43 }
  0xf5   :  { %v1073_v44 = vpop.f32.mrb[0].mxu0  ;;  %v1115_v45 = vpop.f32.mrb[0].mxu1 }
  0xf6   :  { %v1074_v46 = vpop.f32.mrb[1].mxu0  ;;  %v1116_v47 = vpop.f32.mrb[1].mxu1 }
  0xf7   :  { %v1075_v48 = vadd.f32 %v1074_v46, %v1073_v44  ;;  %v1408_v49 = vadd.f32 %v1116_v47, %v1115_v45  ;;  %v1076_v50 = vpop.f32.mrb[2].mxu0  ;;  %v1118_v51 = vpop.f32.mrb[2].mxu1 }
  0xf8   :  { %v1077_v52 = vpop.f32.mrb[3].mxu0  ;;  %v1119_v53 = vpop.f32.mrb[3].mxu1 }
  0xf9   :  { %v1078_v54 = vadd.f32 %v1077_v52, %v1076_v50  ;;  %v1410_v55 = vadd.f32 %v1119_v53, %v1118_v51 }
  0xfd   :  { %v1079_v56 = vpop.f32.mrb[4].mxu0 }
  0xfe   :  { %v1080_v57 = vpop.f32.mrb[5].mxu0 }
  0xff   :  { %v1081_v58 = vadd.f32 %v1080_v57, %v1079_v56  ;;  %v1082_v59 = vpop.f32.mrb[6].mxu0 }
 0x100   :  { %v1083_v60 = vpop.f32.mrb[7].mxu0 }
 0x101   :  { %v1084_v61 = vadd.f32 %v1083_v60, %v1082_v59  ;;  %v1142_v62 = vpop.f32.mrb[4].mxu1  ;;  %v1239_v60 = vmov 0.0  }
 0x102   :  { %v1412_v63 = vadd.f32 %v1142_v62, %v1081_v58  ;;  %v487_v0 = vpop.f32.mrb[5].mxu1  ;;  %1156 = vmatprep.subr.mxu1 %v1239_v60  ;;  %1158 = vmatprep.mubr.msk.f32.mxu1 %vm1240_vm2, %v1239_v60 }
 0x103   :  { %v1414_v1 = vadd.f32 %v1075_v48, %v487_v0  ;;  %v1143_v2 = vpop.f32.mrb[6].mxu1 }
 0x104   :  { %v499_v3 = vadd.f32 %v1143_v2, %v1084_v61  ;;  %v490_v4 = vpop.f32.mrb[7].mxu1  ;;  %570 = vrot.lane.b32.xlu0 %v1412_v63, %s1237_s0  ;;  %v876_v61 = vld [vmem:[%s1567_s3] sm:$0xff] }
 0x105   :  { %v491_v5 = vadd.f32 %v1078_v54, %v490_v4  ;;  %v1085_v6 = vpop.f32.mrb[8].mxu0  ;;  %1157 = vmatpush3.msra.mxu1 %v876_v61 }
 0x106   :  { %671 = vrot.lane.b32.xlu1 %v499_v3, %s1238_s27  ;;  %v1086_v7 = vpop.f32.mrb[9].mxu0 }
 0x107   :  { %v1087_v8 = vadd.f32 %v1086_v7, %v1085_v6  ;;  %v1088_v9 = vpop.f32.mrb[10].mxu0 }
 0x108   :  { %669 = vrot.lane.b32.xlu0 %v1412_v63, %s1238_s27  ;;  %v1089_v10 = vpop.f32.mrb[11].mxu0 }
 0x109   :  { %v1146_v11 = vpop.f32.mrb[8].mxu1  ;;  %v1090_v12 = vadd.f32 %v1089_v10, %v1088_v9 }
 0x10a   :  { %568 = vrot.lane.b32.xlu1 %v491_v5, %s1237_s0  ;;  %v503_v13 = vpop.f32.mrb[9].mxu1 }
 0x10b   :  { %v1422_v14 = vadd.f32 %v1087_v8, %v503_v13  ;;  %v1147_v15 = vpop.f32.mrb[10].mxu1 }
 0x10c   :  { %566 = vrot.lane.b32.xlu0 %v1414_v1, %s1237_s0  ;;  %v506_v16 = vpop.f32.mrb[11].mxu1 }
 0x10d   :  { %v1091_v17 = vpop.f32.mrb[12].mxu0  ;;  %v507_v18 = vadd.f32 %v1090_v12, %v506_v16 }
 0x10e   :  { %v1092_v19 = vpop.f32.mrb[13].mxu0  ;;  %667 = vrot.lane.b32.xlu1 %v491_v5, %s1238_s27 }
 0x10f   :  { %v1093_v20 = vadd.f32 %v1092_v19, %v1091_v17  ;;  %v1094_v21 = vpop.f32.mrb[14].mxu0 }
 0x110   :  { %v1095_v22 = vpop.f32.mrb[15].mxu0  ;;  %665 = vrot.lane.b32.xlu0 %v1414_v1, %s1238_s27 }
 0x111   :  { %v1429_v23 = vadd.f32 %v1146_v11, %v1093_v20  ;;  %v1096_v24 = vadd.f32 %v1095_v22, %v1094_v21  ;;  %v1150_v25 = vpop.f32.mrb[12].mxu1  ;;  %v630_v11 = vlaneseq }
 0x112   :  { %574 = vrot.lane.b32.xlu1 %v1422_v14, %s1237_s0  ;;  %v519_v26 = vpop.f32.mrb[13].mxu1 }
 0x113   :  { %v515_v27 = vadd.f32 %v1147_v15, %v1096_v24  ;;  %v1151_v28 = vpop.f32.mrb[14].mxu1  ;;  %v1481_v16 = vshrl.u32 %v630_v11, 7 }
 0x114   :  { %572 = vrot.lane.b32.xlu0 %v499_v3, %s1237_s0  ;;  %v522_v29 = vpop.f32.mrb[15].mxu1 }
 0x115   :  { %v1097_v30 = vpop.f32.mrb[16].mxu0  ;;  %vm632_vm3 = vcmp.lt.s32.totalorder %v1481_v16, 7  ;;  %vm729_vm4 = vcmp.lt.s32.totalorder %v1481_v16, 6 }
 0x116   :  { %576 = vrot.lane.b32.xlu1 %v507_v18, %s1237_s0  ;;  %v1098_v31 = vpop.f32.mrb[17].mxu0 }
 0x117   :  { %v1099_v32 = vadd.f32 %v1098_v31, %v1097_v30  ;;  %v1100_v33 = vpop.f32.mrb[18].mxu0 }
 0x118   :  { %673 = vrot.lane.b32.xlu0 %v1422_v14, %s1238_s27  ;;  %v1101_v34 = vpop.f32.mrb[19].mxu0 }
 0x119   :  { %v1154_v35 = vpop.f32.mrb[16].mxu1  ;;  %v1437_v36 = vadd.f32 %v1099_v32, %v519_v26  ;;  %v1102_v37 = vadd.f32 %v1101_v34, %v1100_v33 }
 0x11a   :  { %v1440_v38 = vadd.f32 %v1154_v35, %v1408_v49  ;;  %v535_v39 = vpop.f32.mrb[17].mxu1  ;;  %675 = vrot.lane.b32.xlu1 %v507_v18, %s1238_s27 }
 0x11b   :  { %v1155_v40 = vpop.f32.mrb[18].mxu1  ;;  %v523_v41 = vadd.f32 %v1102_v37, %v522_v29 }
 0x11c   :  { %v547_v42 = vadd.f32 %v1155_v40, %v1410_v55  ;;  %578 = vrot.lane.b32.xlu0 %v1429_v23, %s1237_s0  ;;  %v538_v43 = vpop.f32.mrb[19].mxu1 }
 0x11d   :  { %v1103_v44 = vpop.f32.mrb[20].mxu0 }
 0x11e   :  { %v1104_v45 = vpop.f32.mrb[21].mxu0  ;;  %580 = vrot.lane.b32.xlu1 %v515_v27, %s1237_s0 }
 0x11f   :  { %v1105_v46 = vadd.f32 %v1104_v45, %v1103_v44  ;;  %v1106_v47 = vpop.f32.mrb[22].mxu0 }
 0x120   :  { %v1107_v48 = vpop.f32.mrb[23].mxu0  ;;  %677 = vrot.lane.b32.xlu0 %v1429_v23, %s1238_s27 }
 0x121   :  { %v1449_v49 = vadd.f32 %v1150_v25, %v1105_v46  ;;  %v1108_v50 = vadd.f32 %v1107_v48, %v1106_v47 }
 0x122   :  { %679 = vrot.lane.b32.xlu1 %v515_v27, %s1238_s27 }
 0x123   :  { %v531_v51 = vadd.f32 %v1151_v28, %v1108_v50 }
 0x124   :  { %582 = vrot.lane.b32.xlu0 %v1437_v36, %s1237_s0 }
 0x125   :  { %v1109_v52 = vpop.f32.mrb[24].mxu0 }
 0x126   :  { %v1110_v53 = vpop.f32.mrb[25].mxu0  ;;  %584 = vrot.lane.b32.xlu1 %v523_v41, %s1237_s0 }
 0x127   :  { %v1111_v54 = vadd.f32 %v1110_v53, %v1109_v52  ;;  %v1112_v55 = vpop.f32.mrb[26].mxu0 }
 0x128   :  { %v1113_v56 = vpop.f32.mrb[27].mxu0  ;;  %681 = vrot.lane.b32.xlu0 %v1437_v36, %s1238_s27 }
 0x129   :  { %v1457_v57 = vadd.f32 %v1111_v54, %v535_v39  ;;  %v1114_v58 = vadd.f32 %v1113_v56, %v1112_v55 }
 0x12a   :  { %683 = vrot.lane.b32.xlu1 %v523_v41, %s1238_s27 }
 0x12b   :  { %v539_v59 = vadd.f32 %v1114_v58, %v538_v43 }
 0x12c   :  { %594 = vrot.lane.b32.xlu0 %v1440_v38, %s1237_s0 }
 0x12e   :  { %596 = vrot.lane.b32.xlu1 %v547_v42, %s1237_s0 }
 0x130   :  { %586 = vrot.lane.b32.xlu0 %v1449_v49, %s1237_s0 }
 0x132   :  { %588 = vrot.lane.b32.xlu1 %v531_v51, %s1237_s0 }
 0x134   :  { %685 = vrot.lane.b32.xlu0 %v1449_v49, %s1238_s27 }
 0x136   :  { %687 = vrot.lane.b32.xlu1 %v531_v51, %s1238_s27 }
 0x138   :  { %590 = vrot.lane.b32.xlu0 %v1457_v57, %s1237_s0 }
 0x13a   :  { %592 = vrot.lane.b32.xlu1 %v539_v59, %s1237_s0 }
 0x13c   :  { %689 = vrot.lane.b32.xlu0 %v1457_v57, %s1238_s27 }
 0x13e   :  { %691 = vrot.lane.b32.xlu1 %v539_v59, %s1238_s27 }
 0x140   :  { %693 = vrot.lane.b32.xlu0 %v1440_v38, %s1238_s27 }
 0x142   :  { %695 = vrot.lane.b32.xlu1 %v547_v42, %s1238_s27 }
 0x176   :  { %v571_v62 = vpop.permute.xlu0 %570 }
 0x177   :  { %v616_v18 = vrot.slane %v571_v62, 1 }
 0x178   :  { %v672_v0 = vpop.permute.xlu1 %671 }
 0x179   :  { %v716_v29 = vrot.slane %v672_v0, 2 }
 0x17a   :  { %v670_v2 = vpop.permute.xlu0 %669 }
 0x17b   :  { %v715_v24 = vrot.slane %v670_v2, 2 }
 0x17c   :  { %v569_v3 = vpop.permute.xlu1 %568 }
 0x17d   :  { %v615_v32 = vrot.slane %v569_v3, 1  ;;  %v742_v42 = vsel %vm729_vm4, %v715_v24, %v716_v29 }
 0x17e   :  { %v567_v4 = vpop.permute.xlu0 %566 }
 0x17f   :  { %v614_v25 = vrot.slane %v567_v4, 1 }
 0x180   :  { %v668_v5 = vpop.permute.xlu1 %667 }
 0x181   :  { %v647_v43 = vsel %vm632_vm3, %v614_v25, %v615_v32  ;;  %v714_v44 = vrot.slane %v668_v5, 2 }
 0x182   :  { %v666_v6 = vpop.permute.xlu0 %665  ;;  %v649_v58 = vadd.f32 %v647_v43, %v1414_v1 }
 0x183   :  { %v713_v39 = vrot.slane %v666_v6, 2 }
 0x184   :  { %v575_v7 = vpop.permute.xlu1 %574 }
 0x185   :  { %v618_v26 = vrot.slane %v575_v7, 1  ;;  %v744_v54 = vsel %vm729_vm4, %v713_v39, %v714_v44 }
 0x186   :  { %v573_v8 = vpop.permute.xlu0 %572  ;;  %v746_v62 = vadd.f32 %v744_v54, %v649_v58 }
 0x187   :  { %v617_v15 = vrot.slane %v573_v8, 1 }
 0x188   :  { %v577_v9 = vpop.permute.xlu1 %576  ;;  %v764_v8 = vsel %vm729_vm4, %v746_v62, -inf }
 0x189   :  { %v619_v19 = vrot.slane %v577_v9, 1  ;;  %v645_v21 = vsel %vm632_vm3, %v616_v18, %v617_v15 }
 0x18a   :  { %v674_v10 = vpop.permute.xlu0 %673  ;;  %v651_v33 = vadd.f32 %v645_v21, %v1412_v63 }
 0x18b   :  { %v643_v34 = vsel %vm632_vm3, %v618_v26, %v619_v19  ;;  %v717_v35 = vrot.slane %v674_v10, 2 }
 0x18c   :  { %v676_v12 = vpop.permute.xlu1 %675  ;;  %v653_v46 = vadd.f32 %v643_v34, %v1422_v14  ;;  %v748_v51 = vadd.f32 %v742_v42, %v651_v33 }
 0x18d   :  { %v718_v27 = vrot.slane %v676_v12, 2 }
 0x18e   :  { %v579_v13 = vpop.permute.xlu0 %578  ;;  %v766_v0 = vsel %vm729_vm4, %v748_v51, -inf }
 0x18f   :  { %v620_v30 = vrot.slane %v579_v13, 1  ;;  %v740_v63 = vsel %vm729_vm4, %v717_v35, %v718_v27  ;;  %v790_v7 = vsel %vm780_vm5, %v766_v0, -inf }
 0x190   :  { %v581_v17 = vpop.permute.xlu1 %580  ;;  %v750_v55 = vadd.f32 %v740_v63, %v653_v46  ;;  %v793_v12 = vrot.slane %v790_v7, 4 }
 0x191   :  { %v621_v22 = vrot.slane %v581_v17, 1  ;;  %v781_v17 = vsel %vm780_vm5, %v764_v8, -inf }
 0x192   :  { %v678_v20 = vpop.permute.xlu0 %677  ;;  %v768_v3 = vsel %vm729_vm4, %v750_v55, -inf  ;;  %v784_v26 = vrot.slane %v781_v17, 4  ;;  %v794_v27 = vmax.f32 %v790_v7, %v793_v12 }
 0x193   :  { %v641_v40 = vsel %vm632_vm3, %v620_v30, %v621_v22  ;;  %v719_v41 = vrot.slane %v678_v20, 2 }
 0x194   :  { %v680_v28 = vpop.permute.xlu1 %679  ;;  %v655_v52 = vadd.f32 %v641_v40, %v1429_v23  ;;  %v785_v39 = vmax.f32 %v781_v17, %v784_v26  ;;  %v795_v40 = vrot.slane %v794_v27, 2 }
 0x195   :  { %v720_v31 = vrot.slane %v680_v28, 2 }
 0x196   :  { %v583_v37 = vpop.permute.xlu0 %582 }
 0x197   :  { %v738_v47 = vsel %vm729_vm4, %v719_v41, %v720_v31  ;;  %v622_v48 = vrot.slane %v583_v37, 1 }
 0x198   :  { %v585_v45 = vpop.permute.xlu1 %584  ;;  %v752_v59 = vadd.f32 %v738_v47, %v655_v52  ;;  %v786_v52 = vrot.slane %v785_v39, 2 }
 0x199   :  { %v623_v50 = vrot.slane %v585_v45, 1 }
 0x19a   :  { %v682_v53 = vpop.permute.xlu0 %681  ;;  %v770_v1 = vsel %vm729_vm4, %v752_v59, -inf  ;;  %v787_v8 = vmax.f32 %v785_v39, %v786_v52 }
 0x19b   :  { %v639_v56 = vsel %vm632_vm3, %v622_v48, %v623_v50  ;;  %v721_v60 = vrot.slane %v682_v53, 2  ;;  %v808_v11 = vsel %vm780_vm5, %v770_v1, -inf  ;;  %v796_v53 = vmax.f32 %v794_v27, %v795_v40  ;;  %v1054_v27 = vld [vmem:[%s1568_s2] ss:$0 sm:$0xff] }
 0x19c   :  { %v684_v14 = vpop.permute.xlu1 %683  ;;  %v657_v23 = vadd.f32 %v639_v56, %v1437_v36  ;;  %v799_v36 = vsel %vm780_vm5, %v768_v3, -inf  ;;  %v811_v21 = vrot.slane %v808_v11, 4 }
 0x19d   :  { %v722_v61 = vrot.slane %v684_v14, 2  ;;  %v802_v18 = vrot.slane %v799_v36, 4  ;;  %v797_v1 = vrot.slane %v796_v53, 1 }
 0x19e   :  { %v1510_v2 = vpop.permute.xlu0 %594  ;;  %v812_v32 = vmax.f32 %v808_v11, %v811_v21 }
 0x19f   :  { %v736_v4 = vsel %vm729_vm4, %v721_v60, %v722_v61  ;;  %v803_v29 = vmax.f32 %v799_v36, %v802_v18  ;;  %v628_v58 = vrot.slane %v1510_v2, 1  ;;  %v798_v18 = vmax.f32 %v796_v53, %v797_v1 }
 0x1a0   :  { %v754_v5 = vadd.f32 %v736_v4, %v657_v23  ;;  %v597_v6 = vpop.permute.xlu1 %596  ;;  %v813_v45 = vrot.slane %v812_v32, 2 }
 0x1a1   :  { %v804_v43 = vrot.slane %v803_v29, 2  ;;  %v629_v50 = vrot.slane %v597_v6, 1 }
 0x1a2   :  { %v772_v9 = vsel %vm729_vm4, %v754_v5, -inf  ;;  %v587_v10 = vpop.permute.xlu0 %586  ;;  %v814_v60 = vmax.f32 %v812_v32, %v813_v45 }
 0x1a3   :  { %v817_v13 = vsel %vm780_vm5, %v772_v9, -inf  ;;  %v624_v19 = vrot.slane %v587_v10, 1  ;;  %v805_v56 = vmax.f32 %v803_v29, %v804_v43  ;;  %v633_v3 = vsel %vm632_vm3, %v628_v58, %v629_v50 }
 0x1a4   :  { %v589_v15 = vpop.permute.xlu1 %588  ;;  %v820_v24 = vrot.slane %v817_v13, 4  ;;  %v815_v10 = vrot.slane %v814_v60, 1  ;;  %v663_v11 = vadd.f32 %v633_v3, %v1440_v38 }
 0x1a5   :  { %v625_v20 = vrot.slane %v589_v15, 1  ;;  %v806_v2 = vrot.slane %v805_v56, 1 }
 0x1a6   :  { %v686_v22 = vpop.permute.xlu0 %685  ;;  %v821_v35 = vmax.f32 %v817_v13, %v820_v24  ;;  %v788_v24 = vrot.slane %v787_v8, 1 }
 0x1a7   :  { %v637_v25 = vsel %vm632_vm3, %v624_v19, %v625_v20  ;;  %v723_v30 = vrot.slane %v686_v22, 2  ;;  %v807_v22 = vmax.f32 %v805_v56, %v806_v2  ;;  %v1055_v2 = vld [vmem:[%s1569_s4] ss:$0 sm:$0xff] }
 0x1a8   :  { %v688_v28 = vpop.permute.xlu1 %687  ;;  %v659_v33 = vadd.f32 %v637_v25, %v1449_v49  ;;  %v822_v48 = vrot.slane %v821_v35, 2  ;;  %v816_v25 = vmax.f32 %v814_v60, %v815_v10 }
 0x1a9   :  { %v724_v31 = vrot.slane %v688_v28, 2 }
 0x1aa   :  { %v591_v34 = vpop.permute.xlu0 %590  ;;  %v823_v23 = vmax.f32 %v821_v35, %v822_v48  ;;  %v789_v35 = vmax.f32 %v787_v8, %v788_v24 }
 0x1ab   :  { %v734_v37 = vsel %vm729_vm4, %v723_v30, %v724_v31  ;;  %v626_v44 = vrot.slane %v591_v34, 1  ;;  %v861_v30 = vadd.f32 %v1054_v27, %v798_v18  ;;  %v862_v34 = vadd.f32 %v1054_v27, %v807_v22 }
 0x1ac   :  { %v756_v41 = vadd.f32 %v734_v37, %v659_v33  ;;  %v593_v42 = vpop.permute.xlu1 %592  ;;  %v824_v13 = vrot.slane %v823_v23, 1  ;;  %v863_v37 = vadd.f32 %v1054_v27, %v816_v25  ;;  %v860_v45 = vadd.f32 %v1054_v27, %v789_v35 }
 0x1ad   :  { %v627_v63 = vrot.slane %v593_v42, 1  ;;  %v869_v42 = vmax.f32 %v861_v30, 0.0 }
 0x1ae   :  { %v774_v46 = vsel %vm729_vm4, %v756_v41, -inf  ;;  %v690_v47 = vpop.permute.xlu0 %689  ;;  %v825_v28 = vmax.f32 %v823_v23, %v824_v13 }
 0x1af   :  { %v826_v49 = vsel %vm780_vm5, %v774_v46, -inf  ;;  %v635_v51 = vsel %vm632_vm3, %v626_v44, %v627_v63  ;;  %v725_v59 = vrot.slane %v690_v47, 2  ;;  %v870_v63 = vmax.f32 %v862_v34, 0.0 }
 0x1b0   :  { %v829_v54 = vrot.slane %v826_v49, 4  ;;  %v692_v55 = vpop.permute.xlu1 %691  ;;  %v661_v62 = vadd.f32 %v635_v51, %v1457_v57  ;;  %v864_v41 = vadd.f32 %v1054_v27, %v825_v28  ;;  %v871_v46 = vmax.f32 %v863_v37, 0.0 }
 0x1b1   :  { %v726_v14 = vrot.slane %v692_v55, 2  ;;  %v868_v55 = vmax.f32 %v860_v45, 0.0 }
 0x1b2   :  { %v830_v61 = vmax.f32 %v826_v49, %v829_v54  ;;  %v694_v0 = vpop.permute.xlu0 %693  ;;  %v872_v50 = vmax.f32 %v864_v41, 0.0  ;;  %v892_v49 = vrot.slane %v869_v42, 7  ;;  %v895_v54 = vrot.slane %v870_v63, 6 }
 0x1b3   :  { %v732_v4 = vsel %vm729_vm4, %v725_v59, %v726_v14  ;;  %v727_v36 = vrot.slane %v694_v0, 2  ;;  %v898_v56 = vrot.slane %v871_v46, 5 }
 0x1b4   :  { %v831_v5 = vrot.slane %v830_v61, 2  ;;  %v758_v6 = vadd.f32 %v732_v4, %v661_v62  ;;  %v696_v7 = vpop.permute.xlu1 %695  ;;  %v901_v14 = vrot.slane %v872_v50, 4  ;;  %v894_v62 = vsel %vm893_vm6, %v892_v49, %v868_v55 }
 0x1b5   :  { %v728_v9 = vrot.slane %v696_v7, 2  ;;  %v897_v0 = vsel %vm896_vm7, %v895_v54, %v894_v62 }
 0x1b6   :  { %v832_v57 = vmax.f32 %v830_v61, %v831_v5  ;;  %v776_v12 = vsel %vm729_vm4, %v758_v6, -inf  ;;  %v900_v4 = vsel %vm899_vm8, %v898_v56, %v897_v0 }
 0x1b7   :  { %v835_v15 = vsel %vm780_vm5, %v776_v12, -inf  ;;  %v730_v17 = vsel %vm729_vm4, %v727_v36, %v728_v9  ;;  %v903_v1 = vsel %vm902_vm9, %v901_v14, %v900_v4 }
 0x1b8   :  { %v833_v19 = vrot.slane %v832_v57, 1  ;;  %v838_v20 = vrot.slane %v835_v15, 4  ;;  %v760_v21 = vadd.f32 %v730_v17, %v663_v11 }
 0x1ba   :  { %v839_v26 = vmax.f32 %v835_v15, %v838_v20  ;;  %v778_v38 = vsel %vm729_vm4, %v760_v21, -inf  ;;  %v834_v31 = vmax.f32 %v832_v57, %v833_v19 }
 0x1bb   :  { %v844_v29 = vsel %vm780_vm5, %v778_v38, -inf }
 0x1bc   :  { %v840_v32 = vrot.slane %v839_v26, 2  ;;  %v847_v33 = vrot.slane %v844_v29, 4  ;;  %v865_v16 = vadd.f32 %v1054_v27, %v834_v31 }
 0x1be   :  { %v841_v39 = vmax.f32 %v839_v26, %v840_v32  ;;  %v848_v40 = vmax.f32 %v844_v29, %v847_v33  ;;  %v873_v51 = vmax.f32 %v865_v16, 0.0 }
 0x1c0   :  { %v842_v43 = vrot.slane %v841_v39, 1  ;;  %v849_v44 = vrot.slane %v848_v40, 2  ;;  %v904_v60 = vrot.slane %v873_v51, 3 }
 0x1c2   :  { %v843_v47 = vmax.f32 %v841_v39, %v842_v43  ;;  %v850_v48 = vmax.f32 %v848_v40, %v849_v44  ;;  %v906_v5 = vsel %vm905_vm10, %v904_v60, %v903_v1 }
 0x1c4   :  { %v866_v52 = vadd.f32 %v1054_v27, %v843_v47  ;;  %v851_v53 = vrot.slane %v850_v48, 1 }
 0x1c6   :  { %v852_v58 = vmax.f32 %v850_v48, %v851_v53  ;;  %v874_v59 = vmax.f32 %v866_v52, 0.0 }
 0x1c8   :  { %v867_v61 = vadd.f32 %v1054_v27, %v852_v58  ;;  %v907_v23 = vrot.slane %v874_v59, 2 }
 0x1ca   :  { %v875_v3 = vmax.f32 %v867_v61, 0.0  ;;  %v909_v7 = vsel %vm908_vm11, %v907_v23, %v906_v5 }
 0x1cc   :  { %v910_v6 = vrot.slane %v875_v3, 1 }
 0x1ce   :  { %v912_v8 = vsel %vm911_vm12, %v910_v6, %v909_v7 }
 0x1cf   :  { %1159 = vmatmul.mubr.msk.f32.vlgmr.msra.gmra.mrb[20].mxu1 %vm780_vm5, %v912_v8 }
 0x2a2   :  { %v981_v36 = vpop.f32.mrb[20].mxu1 }
 0x2a3   :  { %v982_v9 = vadd.f32 %v1055_v2, %v981_v36  ;;  %v1160_v10 = vpop.f32.mrb[21].mxu1 }
 0x2a5   :  { %v986_v11 = vsel %vm985_vm13, %v982_v9, -inf }
 0x2a6   :  { %987 = vmax.xlane.f32.xlu0 %v986_v11 }
 0x333   :  { %v988_v57 = vpop.xlane.xlu0 %987 }
 0x334   :  { %v989_v12 = vsub.f32 %v982_v9, %v988_v57 }
 0x336   :  { %v990_v13 = vmul.f32 1.442695, %v989_v12 }
 0x338   :  { %1233 = vpow2.f32 %v990_v13 }
 0x342   :  { %v1234_v15 = vpop.eup %1233 }
 0x343   :  { %v992_v17 = vsel %vm985_vm13, %v1234_v15, 0.0 }
 0x344   :  { %993 = vadd.xlane.f32.xlu1 %v992_v17 }
 0x3d1   :  { %v994_v18 = vpop.xlane.xlu1 %993 }
 0x3d2   :  { %1235 = vlog2.f32 %v994_v18 }
 0x3dc   :  { %v1236_v19 = vpop.eup %1235 }
 0x3dd   :  { %v996_v20 = vmul.f32 0.6931472, %v1236_v19 }
 0x3df   :  { %v997_v21 = vsub.f32 %v989_v12, %v996_v20 }
 0x3e1   :  { %998 = vst.msk [vmem:[%s1570_s5] sm:$0xff] %vm985_vm13, %v997_v21 }

</bundles_post_ra>
